<compile_context>
chip_gen: v7x
topology: tpu7x:2x2x1
jax: 0.10.0
libtpu: 0.0.40
codegen_flags: <defaults>
</compile_context>

<pallas_src>
import jax
import jax.numpy as jnp
from jax import lax
from jax.experimental import pallas as pl
from jax.experimental.pallas import tpu as pltpu


def _round_up(v, m):
    return (v + m - 1) // m * m


def _upsample_kernel(x_ref, me_ref, mo_ref, r_ref, b_ref, o_ref):
    """One (batch, row-tile) grid step: 3 MXU matmuls + bias add + dense store.

    x_ref : (Ht, 2*Kp)   channels-on-lanes slab; lanes [0,Kp) hold x[r, :, :],
                         lanes [Kp, 2*Kp) hold the one-row-down-shifted x[r+1, :, :]
    me_ref: (2*Kp, N)    weights x column-parity selection, even output rows
    mo_ref: (2*Kp, N)    weights x column-parity selection, odd output rows
    r_ref : (2*Ht, 2*Ht) 0/1 row-parity interleave selector
    b_ref : (1, N)       bias broadcast row (N = Cout*2W, channel-major lanes)
    o_ref : (2*Ht, N)    dense lane-packed output slab for this tile
    """
    f32 = jnp.float32
    x = x_ref[...].astype(f32)
    rows_e = jnp.dot(x, me_ref[...], preferred_element_type=f32)      # (Ht, N)
    rows_o = jnp.dot(x, mo_ref[...], preferred_element_type=f32)      # (Ht, N)
    stacked = jnp.concatenate([rows_e, rows_o], axis=0)               # (2Ht, N), vregs only
    out = jnp.dot(r_ref[...], stacked, preferred_element_type=f32)    # (2Ht, N)
    o_ref[...] = (out + b_ref[...]).astype(o_ref.dtype)


def upsample_conv_transpose(x, weight, bias):
    """ConvTranspose2d(in, out, k=3, stride=2, padding=1, output_padding=1).

    x:      (B, Cin, H, W)    NCHW
    weight: (Cin, Cout, 3, 3) PyTorch ConvTranspose2d weight layout
    bias:   (Cout,)
    returns (B, Cout, 2H, 2W) NCHW
    """
    B, Cin, H, W = x.shape
    Cout = weight.shape[1]
    f32 = jnp.float32

    N = Cout * 2 * W              # output lanes: all output channels side by side
    K0 = Cin * (W + 1)            # input lanes per row: Cin channels + 1 zero pad column
    Kp = _round_up(K0, 8)

    # ---- row tiling ---------------------------------------------------------
    Hp = _round_up(H, 8)
    # double-buffered (input + output) block bytes per row, kept << v7x's 64 MiB
    row_bytes = (2 * Kp + 2 * N) * 4 * 2
    max_ht = max(8, min(512, (12 * (1 << 20) // row_bytes) // 8 * 8))
    if B >= 2:
        Ht = min(Hp, max_ht)                              # whole image per grid step
    else:
        Ht = min(max(8, (Hp // 2) // 8 * 8), max_ht)      # >=2 tiles -> both TCs busy
    Hp2 = _round_up(Hp, Ht)
    nT = Hp2 // Ht

    # ---- input slab: channels on lanes + the row+1 shifted copy (layout only) ----
    xpad = jnp.pad(x.astype(f32), ((0, 0), (0, 0), (0, Hp2 + 1 - H), (0, 1)))
    xa = xpad[:, :, :Hp2, :]               # rows r
    xb = xpad[:, :, 1:Hp2 + 1, :]          # rows r+1 (zero past the image)

    def to_slab(t):
        t = t.transpose(0, 2, 1, 3).reshape(B, Hp2, K0)
        return jnp.pad(t, ((0, 0), (0, 0), (0, Kp - K0)))

    xslab = jnp.concatenate([to_slab(xa), to_slab(xb)], axis=-1)   # (B, Hp2, 2*Kp)

    # ---- fold weights + column interleave into constant matrices ------------
    # ConvTranspose2d(s=2, p=1, op=1) phase decomposition:
    #   out[2r  ,2c  ] = sum_i w[i,o,1,1] x[r,c]
    #   out[2r  ,2c+1] = sum_i w[i,o,1,2] x[r,c]   + w[i,o,1,0] x[r,c+1]
    #   out[2r+1,2c  ] = sum_i w[i,o,2,1] x[r,c]   + w[i,o,0,1] x[r+1,c]
    #   out[2r+1,2c+1] = sum_i w[i,o,2,2] x[r,c]   + w[i,o,2,0] x[r,c+1]
    #                        + w[i,o,0,2] x[r+1,c] + w[i,o,0,0] x[r+1,c+1]
    w = weight.astype(f32)
    cpr = jnp.arange(W + 1)[:, None]
    jj = jnp.arange(2 * W)[None, :]
    A = (jj == 2 * cpr).astype(f32)            # x[., c]   -> out col 2c
    Bm = (jj == 2 * cpr + 1).astype(f32)       # x[., c]   -> out col 2c+1
    Cm = (jj == 2 * cpr - 1).astype(f32)       # x[., c+1] -> out col 2c+1

    def fold(kh):
        m = (jnp.einsum('io,cj->icoj', w[:, :, kh, 1], A)
             + jnp.einsum('io,cj->icoj', w[:, :, kh, 2], Bm)
             + jnp.einsum('io,cj->icoj', w[:, :, kh, 0], Cm))
        m = m.reshape(K0, N)
        return jnp.pad(m, ((0, Kp - K0), (0, 0)))

    zeros_k = jnp.zeros((Kp, N), f32)
    me_full = jnp.concatenate([fold(1), zeros_k], axis=0)          # even rows: x[r] only
    mo_full = jnp.concatenate([fold(2), fold(0)], axis=0)          # odd rows: x[r] and x[r+1]

    # ---- row-parity interleave selector + bias row ---------------------------
    rr = jnp.arange(2 * Ht)[:, None]
    cc = jnp.arange(2 * Ht)[None, :]
    rsel = (((rr % 2 == 0) & (cc == rr // 2))
            | ((rr % 2 == 1) & (cc == Ht + rr // 2))).astype(f32)  # (2Ht, 2Ht)
    b_row = jnp.repeat(bias.astype(f32), 2 * W).reshape(1, N)

    itemsize = jnp.dtype(x.dtype).itemsize
    flops = int(2 * B * nT * (2 * Ht * (2 * Kp) * N + (2 * Ht) * (2 * Ht) * N))
    bytes_accessed = int(4 * (B * Hp2 * 2 * Kp + 2 * 2 * Kp * N + 4 * Ht * Ht + N)
                         + B * 2 * Hp2 * N * itemsize)

    out = pl.pallas_call(
        _upsample_kernel,
        out_shape=jax.ShapeDtypeStruct((B, 2 * Hp2, N), x.dtype),
        grid_spec=pltpu.PrefetchScalarGridSpec(
            num_scalar_prefetch=0,
            grid=(B, nT),
            in_specs=[
                pl.BlockSpec((None, Ht, 2 * Kp), lambda b, t: (b, t, 0)),
                pl.BlockSpec((2 * Kp, N), lambda b, t: (0, 0)),          # Me (constant)
                pl.BlockSpec((2 * Kp, N), lambda b, t: (0, 0)),          # Mo (constant)
                pl.BlockSpec((2 * Ht, 2 * Ht), lambda b, t: (0, 0)),     # R  (constant)
                pl.BlockSpec((1, N), lambda b, t: (0, 0)),               # bias row
            ],
            out_specs=pl.BlockSpec((None, 2 * Ht, N), lambda b, t: (b, t, 0)),
        ),
        compiler_params=pltpu.CompilerParams(
            dimension_semantics=("parallel", "parallel"),
            vmem_limit_bytes=32 * 1024 * 1024,
        ),
        cost_estimate=pl.CostEstimate(flops=flops, transcendentals=0,
                                      bytes_accessed=bytes_accessed),
    )(xslab, me_full, mo_full, rsel, b_row)

    # Layout plumbing back to NCHW; padded rows (if any) are sliced off.
    out = out.reshape(B, 2 * Hp2, Cout, 2 * W).transpose(0, 2, 1, 3)
    if Hp2 != H:
        out = out[:, :, :2 * H, :]
    return out


if __name__ == "__main__":
    key = jax.random.PRNGKey(0)
    k1, k2, k3 = jax.random.split(key, 3)

    B, Cin, H, W = 2, 4, 16, 16
    Cout = Cin                                   # out_channels=None -> in_channels

    x = jax.random.normal(k1, (B, Cin, H, W), jnp.float32)
    fan = Cin * 3 * 3
    bound = 1.0 / (fan ** 0.5)
    weight = jax.random.uniform(k2, (Cin, Cout, 3, 3), jnp.float32, -bound, bound)
    bias = jax.random.uniform(k3, (Cout,), jnp.float32, -bound, bound)

    up = jax.jit(upsample_conv_transpose)
    out = jax.block_until_ready(up(x, weight, bias))
    assert out.shape == (B, Cout, 2 * H, 2 * W), out.shape

    # Reference: ConvTranspose2d == lhs-dilated cross-correlation with flipped kernel.
    k_oihw = jnp.flip(weight, axis=(2, 3)).transpose(1, 0, 2, 3)
    ref = lax.conv_general_dilated(
        x, k_oihw, window_strides=(1, 1), padding=((1, 2), (1, 2)),
        lhs_dilation=(2, 2), dimension_numbers=("NCHW", "OIHW", "NCHW"),
    ) + bias[None, :, None, None]
    err = float(jnp.max(jnp.abs(out - ref)))
    assert jnp.allclose(out, ref, atol=1e-4, rtol=1e-4), err

    print("KERNEL_OK")
</pallas_src>

<mosaic_0001>
module attributes {stable_mosaic.version = 11 : i64} {
  func.func @_upsample_kernel(%arg0: i32, %arg1: i32, %arg2: memref<1x16x144xf32, #tpu.memory_space<vmem>>, %arg3: memref<144x128xf32, #tpu.memory_space<vmem>>, %arg4: memref<144x128xf32, #tpu.memory_space<vmem>>, %arg5: memref<32x32xf32, #tpu.memory_space<vmem>>, %arg6: memref<1x128xf32, #tpu.memory_space<vmem>>, %arg7: memref<1x32x128xf32, #tpu.memory_space<vmem>>) attributes {dimension_semantics = [#tpu.dimension_semantics<parallel>, #tpu.dimension_semantics<parallel>], iteration_bounds = array<i64: 2, 1>, scalar_prefetch = 0 : i64, scratch_operands = 0 : i64, tpu.core_type = #tpu.core_type<tc>, window_params = [{transform_indices = @transform_0, window_bounds = array<i64: 1, 16, 144>}, {pipeline_mode = #tpu.pipeline_mode<synchronous>, transform_indices = @transform_1, window_bounds = array<i64: 144, 128>}, {pipeline_mode = #tpu.pipeline_mode<synchronous>, transform_indices = @transform_2, window_bounds = array<i64: 144, 128>}, {pipeline_mode = #tpu.pipeline_mode<synchronous>, transform_indices = @transform_3, window_bounds = array<i64: 32, 32>}, {pipeline_mode = #tpu.pipeline_mode<synchronous>, transform_indices = @transform_4, window_bounds = array<i64: 1, 128>}, {transform_indices = @transform_5, window_bounds = array<i64: 1, 32, 128>}]} {
    %c0 = arith.constant 0 : index
    %c0_0 = arith.constant 0 : index
    %c0_1 = arith.constant 0 : index
    %0 = vector.load %arg2[%c0, %c0_0, %c0_1] : memref<1x16x144xf32, #tpu.memory_space<vmem>>, vector<1x16x144xf32>
    %1 = vector.shape_cast %0 : vector<1x16x144xf32> to vector<16x144xf32>
    %c0_2 = arith.constant 0 : index
    %c0_3 = arith.constant 0 : index
    %2 = vector.load %arg3[%c0_2, %c0_3] : memref<144x128xf32, #tpu.memory_space<vmem>>, vector<144x128xf32>
    %cst = arith.constant dense<0.000000e+00> : vector<16x128xf32>
    %3 = tpu.matmul %1, %2, %cst {dimension_numbers = #tpu.dot_dimension_numbers<[1], [0], [0], [1], [0, 0, 1, 1], [], []>} : vector<16x144xf32>, vector<144x128xf32>, vector<16x128xf32> -> vector<16x128xf32>
    %c0_4 = arith.constant 0 : index
    %c0_5 = arith.constant 0 : index
    %4 = vector.load %arg4[%c0_4, %c0_5] : memref<144x128xf32, #tpu.memory_space<vmem>>, vector<144x128xf32>
    %cst_6 = arith.constant dense<0.000000e+00> : vector<16x128xf32>
    %5 = tpu.matmul %1, %4, %cst_6 {dimension_numbers = #tpu.dot_dimension_numbers<[1], [0], [0], [1], [0, 0, 1, 1], [], []>} : vector<16x144xf32>, vector<144x128xf32>, vector<16x128xf32> -> vector<16x128xf32>
    %6 = tpu.concatenate %3, %5 in 0 : vector<16x128xf32>, vector<16x128xf32> -> vector<32x128xf32>
    %c0_7 = arith.constant 0 : index
    %c0_8 = arith.constant 0 : index
    %7 = vector.load %arg5[%c0_7, %c0_8] : memref<32x32xf32, #tpu.memory_space<vmem>>, vector<32x32xf32>
    %cst_9 = arith.constant dense<0.000000e+00> : vector<32x128xf32>
    %8 = tpu.matmul %7, %6, %cst_9 {dimension_numbers = #tpu.dot_dimension_numbers<[1], [0], [0], [1], [0, 0, 1, 1], [], []>} : vector<32x32xf32>, vector<32x128xf32>, vector<32x128xf32> -> vector<32x128xf32>
    %c0_10 = arith.constant 0 : index
    %c0_11 = arith.constant 0 : index
    %9 = vector.load %arg6[%c0_10, %c0_11] : memref<1x128xf32, #tpu.memory_space<vmem>>, vector<1x128xf32>
    %10 = vector.broadcast %9 : vector<1x128xf32> to vector<32x128xf32>
    %11 = arith.addf %8, %10 : vector<32x128xf32>
    %c0_12 = arith.constant 0 : index
    %c0_13 = arith.constant 0 : index
    %c0_14 = arith.constant 0 : index
    %12 = vector.load %arg7[%c0_12, %c0_13, %c0_14] : memref<1x32x128xf32, #tpu.memory_space<vmem>>, vector<1x32x128xf32>
    %13 = vector.shape_cast %12 : vector<1x32x128xf32> to vector<32x128xf32>
    %14 = vector.shape_cast %11 : vector<32x128xf32> to vector<1x32x128xf32>
    tpu.vector_store %arg7[%c0_12, %c0_13, %c0_14], %14 {strides = array<i32>} : memref<1x32x128xf32, #tpu.memory_space<vmem>>, vector<1x32x128xf32>,
    return
  }
  func.func @transform_0(%arg0: i32, %arg1: i32) -> (i32, i32, i32) {
    %c0_i32 = arith.constant 0 : i32
    %c0_i32_0 = arith.constant 0 : i32
    return %arg0, %arg1, %c0_i32 : i32, i32, i32
  }
  func.func @transform_1(%arg0: i32, %arg1: i32) -> (i32, i32) {
    %c0_i32 = arith.constant 0 : i32
    %c0_i32_0 = arith.constant 0 : i32
    %c0_i32_1 = arith.constant 0 : i32
    return %c0_i32, %c0_i32_0 : i32, i32
  }
  func.func @transform_2(%arg0: i32, %arg1: i32) -> (i32, i32) {
    %c0_i32 = arith.constant 0 : i32
    %c0_i32_0 = arith.constant 0 : i32
    %c0_i32_1 = arith.constant 0 : i32
    return %c0_i32, %c0_i32_0 : i32, i32
  }
  func.func @transform_3(%arg0: i32, %arg1: i32) -> (i32, i32) {
    %c0_i32 = arith.constant 0 : i32
    %c0_i32_0 = arith.constant 0 : i32
    %c0_i32_1 = arith.constant 0 : i32
    return %c0_i32, %c0_i32_0 : i32, i32
  }
  func.func @transform_4(%arg0: i32, %arg1: i32) -> (i32, i32) {
    %c0_i32 = arith.constant 0 : i32
    %c0_i32_0 = arith.constant 0 : i32
    %c0_i32_1 = arith.constant 0 : i32
    return %c0_i32, %c0_i32_0 : i32, i32
  }
  func.func @transform_5(%arg0: i32, %arg1: i32) -> (i32, i32, i32) {
    %c0_i32 = arith.constant 0 : i32
    %c0_i32_0 = arith.constant 0 : i32
    return %arg0, %arg1, %c0_i32 : i32, i32, i32
  }
}

</mosaic_0001>

<bundles_post_ra>
// kernel: upsample_conv_transpose.1
= control target key start
LH: loop header
LB: loop body
LE: loop exit
PB: predicated region body
PF: predicated region fallthrough
CT: control target
= control target key end

     0   :  { %s857_s18 = smov 0   ;;  %s859_s19 = smov 0   ;;  %s1052_s0 = inlined_call_operand.vmem [shape: f32[2,16,144], index: 0, kind: input, shape index: {}]   ;;  %s1053_s1 = inlined_call_operand.vmem [shape: f32[144,128], index: 1, kind: input, shape index: {}]   ;;  %s1054_s2 = inlined_call_operand.vmem [shape: f32[144,128], index: 2, kind: input, shape index: {}]   ;;  %s1055_s3 = inlined_call_operand.vmem [shape: f32[32,32], index: 3, kind: input, shape index: {}]   ;;  %s1056_s4 = inlined_call_operand.vmem [shape: f32[1,128], index: 4, kind: input, shape index: {}]   ;;  %s1057_s5 = inlined_call_operand.vmem [shape: f32[2,32,128], index: 5, kind: output, shape index: {}]  }
   0x1   :  { %s861_s20 = smov 0  }
   0x2 LB: > { %s27_s21 = sadd.s32 1, %s820_s19  ;;  %p671_p0 = scmp.ge.s32.totalorder %s824_s20, 1  ;;  %s824_s20 = sphi %s861_s20, %s15_s20   ;;  %s820_s19 = sphi %s859_s19, %s1059_s19   ;;  %s816_s18 = sphi %s857_s18, %s1058_s18  }
   0x3   : > { %p29_p1 = scmp.ge.s32.totalorder %s27_s21, 2  ;;  %p209_p2 = scmp.lt.s32.totalorder %s824_s20, 3 }
   0x5   : > { %s1061_s21 = smov (%p29_p1, %s27_s21), 0  ;;  %p210_p3 = pnand %p671_p0, %p209_p2 }
   0x6   : > { %v271_v0 = vld [vmem:[%s1053_s1] sm:$0xff] (!%p210_p3)  ;;  %v272_v1 = vld [vmem:[%s1053_s1 + $0x8] sm:$0xff] (!%p210_p3)  ;;  %p247_p4 = scmp.lt.s32.totalorder (!%p210_p3), %s816_s18, 1  ;;  %v826_v3 = vmov (!%p210_p3), 0.0|0.0   ;;  %v273_v6 = vld [vmem:[%s1053_s1 + $0x10] sm:$0xff] (!%p210_p3)  ;;  %vm289_vm0 = vcmask (!%p210_p3), 130048  }
   0x7   : > { %213 = sbr.rel (%p210_p3) target bundleno = 486 (0x1e6), region = 40  ;;  %v371_v2 = vld [vmem:[%s1054_s2] sm:$0xff] (!%p210_p3)  ;;  %711 = vmatprep.subr.bf16.mxu0 (!%p210_p3), %v826_v3  ;;  %738 = vmatprep.subr.bf16.mxu1 (!%p210_p3), %v826_v3  ;;  %v712_v4 = vpack.c.bf16 (!%p210_p3), %v272_v1, %v271_v0  ;;  %v372_v5 = vld [vmem:[%s1054_s2 + $0x8] sm:$0xff] (!%p210_p3)  ;;  %v274_v7 = vld [vmem:[%s1053_s1 + $0x18] sm:$0xff] (!%p210_p3)  ;;  %vm475_vm1 = vcmask (!%p210_p3), 261120  }
   0x8   : > { %v739_v8 = vpack.c.bf16 (!%p210_p3), %v372_v5, %v371_v2  ;;  %v373_v9 = vld [vmem:[%s1054_s2 + $0x10] sm:$0xff] (!%p210_p3)  ;;  %v374_v10 = vld [vmem:[%s1054_s2 + $0x18] sm:$0xff] (!%p210_p3)  ;;  %v715_v11 = vpack.c.bf16 (!%p210_p3), %v274_v7, %v273_v6  ;;  %v275_v13 = vld [vmem:[%s1053_s1 + $0x20] sm:$0xff] (!%p210_p3) }
   0x9   : > { %713 = vmatpush1.bf16.msra.mxu0 (!%p210_p3), %v712_v4  ;;  %v742_v12 = vpack.c.bf16 (!%p210_p3), %v374_v10, %v373_v9  ;;  %v276_v14 = vld [vmem:[%s1053_s1 + $0x28] sm:$0xff] (!%p210_p3)  ;;  %v375_v15 = vld [vmem:[%s1054_s2 + $0x20] sm:$0xff] (!%p210_p3)  ;;  %v277_v19 = vld [vmem:[%s1053_s1 + $0x30] sm:$0xff] (!%p210_p3) }
   0xa   : > { %740 = vmatpush1.bf16.msra.mxu1 (!%p210_p3), %v739_v8  ;;  %714 = vmatprep.subr.bf16.mxu0 (!%p210_p3), %v826_v3  ;;  %v376_v16 = vld [vmem:[%s1054_s2 + $0x28] sm:$0xff] (!%p210_p3)  ;;  %v718_v17 = vpack.c.bf16 (!%p210_p3), %v276_v14, %v275_v13  ;;  %v278_v20 = vld [vmem:[%s1053_s1 + $0x38] sm:$0xff] (!%p210_p3)  ;;  %v377_v21 = vld [vmem:[%s1054_s2 + $0x30] sm:$0xff] (!%p210_p3) }
   0xb   : > { %741 = vmatprep.subr.bf16.mxu1 (!%p210_p3), %v826_v3  ;;  %v745_v18 = vpack.c.bf16 (!%p210_p3), %v376_v16, %v375_v15  ;;  %v378_v22 = vld [vmem:[%s1054_s2 + $0x38] sm:$0xff] (!%p210_p3)  ;;  %v721_v23 = vpack.c.bf16 (!%p210_p3), %v278_v20, %v277_v19  ;;  %v279_v25 = vld [vmem:[%s1053_s1 + $0x40] sm:$0xff] (!%p210_p3)  ;;  %v280_v26 = vld [vmem:[%s1053_s1 + $0x48] sm:$0xff] (!%p210_p3) }
   0xc   : > { %v748_v24 = vpack.c.bf16 (!%p210_p3), %v378_v22, %v377_v21  ;;  %v379_v28 = vld [vmem:[%s1054_s2 + $0x40] sm:$0xff] (!%p210_p3)  ;;  %v380_v29 = vld [vmem:[%s1054_s2 + $0x48] sm:$0xff] (!%p210_p3)  ;;  %v724_v30 = vpack.c.bf16 (!%p210_p3), %v280_v26, %v279_v25  ;;  %v281_v32 = vld [vmem:[%s1053_s1 + $0x50] sm:$0xff] (!%p210_p3) }
   0xd   : > { %716 = vmatpush1.bf16.msra.mxu0 (!%p210_p3), %v715_v11  ;;  %v751_v31 = vpack.c.bf16 (!%p210_p3), %v380_v29, %v379_v28  ;;  %v282_v33 = vld [vmem:[%s1053_s1 + $0x58] sm:$0xff] (!%p210_p3)  ;;  %v381_v34 = vld [vmem:[%s1054_s2 + $0x50] sm:$0xff] (!%p210_p3)  ;;  %v283_v38 = vld [vmem:[%s1053_s1 + $0x60] sm:$0xff] (!%p210_p3) }
   0xe   : > { %s1063_s18 = smov (!%p247_p4, %s816_s18), 1  ;;  %743 = vmatpush1.bf16.msra.mxu1 %v742_v12  ;;  %717 = vmatprep.subr.bf16.mxu0 %v826_v3  ;;  %v382_v35 = vld [vmem:[%s1054_s2 + $0x58] sm:$0xff]  ;;  %v727_v36 = vpack.c.bf16 %v282_v33, %v281_v32  ;;  %v284_v39 = vld [vmem:[%s1053_s1 + $0x68] sm:$0xff]  ;;  %v383_v40 = vld [vmem:[%s1054_s2 + $0x60] sm:$0xff] }
   0xf   : > { %s687_s25 = sshll.u32 %s1063_s18, 5  ;;  %744 = vmatprep.subr.bf16.mxu1 %v826_v3  ;;  %v754_v37 = vpack.c.bf16 %v382_v35, %v381_v34  ;;  %v384_v41 = vld [vmem:[%s1054_s2 + $0x68] sm:$0xff]  ;;  %v730_v42 = vpack.c.bf16 %v284_v39, %v283_v38  ;;  %v285_v44 = vld [vmem:[%s1053_s1 + $0x70] sm:$0xff]  ;;  %v286_v45 = vld [vmem:[%s1053_s1 + $0x78] sm:$0xff] }
  0x10   : > { %s937_s11 = scalar_lea.vmem %s1052_s0, %s687_s25  ;;  %v757_v43 = vpack.c.bf16 %v384_v41, %v383_v40  ;;  %v385_v46 = vld [vmem:[%s1054_s2 + $0x70] sm:$0xff]  ;;  %v386_v47 = vld [vmem:[%s1054_s2 + $0x78] sm:$0xff]  ;;  %v733_v48 = vpack.c.bf16 %v286_v45, %v285_v44  ;;  %v287_v50 = vld [vmem:[%s1053_s1 + $0x80] sm:$0xff]  ;;  %s265_s30 = scalar_lea.vmem %s1057_s5, %s687_s25 }
  0x11   : > { %719 = vmatpush1.bf16.msra.mxu0 %v718_v17  ;;  %v268_v27 = vld [vmem:[%s937_s11 + $0x8] sm:$0xff]  ;;  %v760_v49 = vpack.c.bf16 %v386_v47, %v385_v46  ;;  %v387_v52 = vld [vmem:[%s1054_s2 + $0x80] sm:$0xff]  ;;  %v270_v57 = vld [vmem:[%s937_s11 + $0x18] sm:$0xff] }
  0x12   : > { %746 = vmatpush1.bf16.msra.mxu1 %v745_v18  ;;  %720 = vmatprep.subr.bf16.mxu0 %v826_v3  ;;  %v288_v51 = vld [vmem:[%s1053_s1 + $0x88] sm:$0xff]  ;;  %v267_v56 = vld [vmem:[%s937_s11] sm:$0xff]  ;;  %v269_v58 = vld [vmem:[%s937_s11 + $0x10] sm:$0xff] }
  0x13   : > { %747 = vmatprep.subr.bf16.mxu1 %v826_v3  ;;  %676 = vmatprep.mubr.msk.f32.mxu0 %vm289_vm0, %v268_v27  ;;  %v388_v53 = vld [vmem:[%s1054_s2 + $0x88] sm:$0xff]  ;;  %v736_v54 = vpack.c.bf16 %v288_v51, %v287_v50  ;;  %v464_v59 = vld [vmem:[%s1055_s3] sm:$0xff]  ;;  %v466_v60 = vld [vmem:[%s1055_s3 + $0x10] sm:$0xff] }
  0x14   : > { %678 = vmatprep.mubr.msk.f32.mxu1 %vm289_vm0, %v268_v27  ;;  %v763_v55 = vpack.c.bf16 %v388_v53, %v387_v52  ;;  %v465_v7 = vld [vmem:[%s1055_s3 + $0x8] sm:$0xff]  ;;  %v467_v8 = vld [vmem:[%s1055_s3 + $0x18] sm:$0xff]  ;;  %v680_v9 = vld [vmem:[%s1056_s4] ss:$0 sm:$0xff] }
  0x15   : > { %722 = vmatpush1.bf16.msra.mxu0 %v721_v23 }
  0x16   : > { %749 = vmatpush1.bf16.msra.mxu1 %v748_v24  ;;  %723 = vmatprep.subr.bf16.mxu0 %v826_v3 }
  0x17   : > { %750 = vmatprep.subr.bf16.mxu1 %v826_v3 }
  0x19   : > { %725 = vmatpush1.bf16.msra.mxu0 %v724_v30 }
  0x1a   : > { %752 = vmatpush1.bf16.msra.mxu1 %v751_v31  ;;  %726 = vmatprep.subr.bf16.mxu0 %v826_v3 }
  0x1b   : > { %753 = vmatprep.subr.bf16.mxu1 %v826_v3 }
  0x1d   : > { %728 = vmatpush1.bf16.msra.mxu0 %v727_v36 }
  0x1e   : > { %755 = vmatpush1.bf16.msra.mxu1 %v754_v37  ;;  %729 = vmatprep.subr.bf16.mxu0 %v826_v3 }
  0x1f   : > { %756 = vmatprep.subr.bf16.mxu1 %v826_v3 }
  0x21   : > { %731 = vmatpush1.bf16.msra.mxu0 %v730_v42 }
  0x22   : > { %758 = vmatpush1.bf16.msra.mxu1 %v757_v43  ;;  %732 = vmatprep.subr.bf16.mxu0 %v826_v3 }
  0x23   : > { %759 = vmatprep.subr.bf16.mxu1 %v826_v3 }
  0x25   : > { %734 = vmatpush1.bf16.msra.mxu0 %v733_v48 }
  0x26   : > { %761 = vmatpush1.bf16.msra.mxu1 %v760_v49  ;;  %735 = vmatprep.subr.bf16.mxu0 %v826_v3 }
  0x27   : > { %762 = vmatprep.subr.bf16.mxu1 %v826_v3 }
  0x29   : > { %737 = vmatpush1.bf16.msra.mxu0 %v736_v54 }
  0x2a   : > { %764 = vmatpush1.bf16.msra.mxu1 %v763_v55 }
  0x2c   : > { %361 = vmatmul.mubr.f32.vlgmr.msra.gmra.mrb[0].mxu0 %v267_v56 }
  0x2d   : > { %454 = vmatmul.mubr.f32.vlgmr.msra.gmra.mrb[0].mxu1 %v267_v56  ;;  %677 = vmatprep.mubr.msk.f32.mxu0 %vm289_vm0, %v270_v57 }
  0x2e   : > { %679 = vmatprep.mubr.msk.f32.mxu1 %vm289_vm0, %v270_v57 }
  0x30   : > { %366 = vmatmul.mubr.f32.gmra.mrb[2].mxu0 %v269_v58 }
  0x31   : > { %459 = vmatmul.mubr.f32.gmra.mrb[2].mxu1 %v269_v58  ;;  %705 = vmatprep.mubr.msk.f32.mxu0 %vm475_vm1, %v464_v59 }
  0x32   : > { %708 = vmatprep.mubr.msk.f32.mxu1 %vm475_vm1, %v466_v60 }
  0xff   : > { %v362_v61 = vpop.f32.mrb[0].mxu0 }
 0x100   : > { %v364_v62 = vpop.f32.mrb[1].mxu0  ;;  %v455_v63 = vpop.f32.mrb[0].mxu1 }
 0x101   : > { %v457_v0 = vpop.f32.mrb[1].mxu1 }
 0x103   : > { %v367_v1 = vpop.f32.mrb[2].mxu0 }
 0x104   : > { %v765_v2 = vpack.c.bf16 %v367_v1, %v362_v61  ;;  %v460_v3 = vpop.f32.mrb[2].mxu1  ;;  %v369_v4 = vpop.f32.mrb[3].mxu0 }
 0x105   : > { %v769_v5 = vpack.c.bf16 %v460_v3, %v455_v63  ;;  %v462_v6 = vpop.f32.mrb[3].mxu1 }
 0x106   : > { %766 = vmatprep.subr.bf16.mxu0 %v765_v2  ;;  %773 = vmatprep.subr.bf16.mxu1 %v765_v2 }
 0x107   : > { %768 = vmatpush3.bf16.msra.mxu0 %v765_v2  ;;  %775 = vmatpush3.bf16.msra.mxu1 %v765_v2 }
 0x108   : > { %770 = vmatprep.subr.bf16.mxu0 %v769_v5  ;;  %774 = vmatprep.subr.bf16.mxu1 %v769_v5 }
 0x10b   : > { %772 = vmatpush3.bf16.msra.mxu0 %v769_v5  ;;  %776 = vmatpush3.bf16.msra.mxu1 %v769_v5 }
 0x10e   : > { %706 = vmatmul.mubr.msk.f32.vlgmr.msra.gmra.mrb[4].mxu0 %vm475_vm1, %v465_v7  ;;  %709 = vmatmul.mubr.msk.f32.vlgmr.msra.gmra.mrb[4].mxu1 %vm475_vm1, %v467_v8 }
 0x1e1   : > { %v707_v10 = vpop.f32.mrb[4].mxu0  ;;  %v710_v11 = vpop.f32.mrb[4].mxu1 }
 0x1e2   : > { %v560_v12 = vadd.f32 %v707_v10, %v680_v9  ;;  %v570_v13 = vadd.f32 %v710_v11, %v680_v9  ;;  %v554_v14 = vpop.f32.mrb[5].mxu0  ;;  %v564_v15 = vpop.f32.mrb[5].mxu1 }
 0x1e3   : > { %v555_v16 = vadd.f32 %v680_v9, %v554_v14  ;;  %v565_v17 = vadd.f32 %v680_v9, %v564_v15 }
 0x1e4   : > { %574 = vst [vmem:[%s265_s30 + $0x8] sm:$0xff] %v560_v12  ;;  %576 = vst [vmem:[%s265_s30 + $0x18] sm:$0xff] %v570_v13 }
 0x1e5   : > { %573 = vst [vmem:[%s265_s30] sm:$0xff] %v555_v16  ;;  %575 = vst [vmem:[%s265_s30 + $0x10] sm:$0xff] %v565_v17 }
 0x1e6 PF: > { %s15_s20 = sadd.s32 1, %s824_s20   ;;  %s1058_s18 = smov %s820_s19 }
 0x1e7   : > { %p12_p5 = scmp.ge.s32.totalorder %s15_s20, 4   ;;  %s1059_s19 = smov %s1061_s21 }
 0x1e9   :  { %14 = sbr.rel (!%p12_p5) target bundleno = 2 (0x2), region = 70 }

</bundles_post_ra>
